<compile_context>
chip_gen: v7x
topology: tpu7x:2x2x1
jax: 0.10.0
libtpu: 0.0.40
codegen_flags: <defaults>
</compile_context>

<pallas_src>
import functools

import jax
import jax.numpy as jnp
from jax.experimental import pallas as pl
from jax.experimental.pallas import tpu as pltpu


_LANES = 128  # lane width of the per-block partial-sum output row


def _loss_kernel(start_ref, end_ref, sgt_ref, egt_ref, out_ref, *, bs):
    """Writes this block's partial sum of clamped BCE log-terms (both heads),
    lane-broadcast into a (1, 128) output row indexed by the grid step."""
    pid = pl.program_id(0)
    block_rows = start_ref.shape[0]

    # In-kernel upcasts (VPU) — no wrapper-side HBM pass over the inputs.
    start = start_ref[...].astype(jnp.float32)
    end = end_ref[...].astype(jnp.float32)
    sgt = sgt_ref[...].astype(jnp.float32)
    egt = egt_ref[...].astype(jnp.float32)

    # Mask rows beyond the true batch size (last block may be partial).
    row = pid * block_rows + jax.lax.broadcasted_iota(jnp.int32, start.shape, 0)
    valid = row < bs

    # Hard 0/1 targets (torch does `gt.float()` on integer labels):
    #   t*log(p) + (1-t)*log(1-p) == log(where(t > 0.5, p, 1-p))
    # Each log term is clamped at -100, matching torch.nn.BCELoss.
    # OOB rows are forced to 1.0 *before* the log (log(1)=0, no NaN risk).
    sel_s = jnp.where(valid, jnp.where(sgt > 0.5, start, 1.0 - start), 1.0)
    sel_e = jnp.where(valid, jnp.where(egt > 0.5, end, 1.0 - end), 1.0)
    terms = (jnp.maximum(jnp.log(sel_s), -100.0)
             + jnp.maximum(jnp.log(sel_e), -100.0))

    psum = jnp.sum(terms)  # single cross-lane collapse per block (XLU slot)
    out_ref[...] = jnp.broadcast_to(psum, (1, _LANES)).astype(jnp.float32)


def _vmem_limit_bytes():
    """Generation-aware scoped-VMEM budget: v5e/v6e have 128 MiB physical VMEM
    (allow ~64 MiB scoped); v7x has only 64 MiB (cap at ~48 MiB)."""
    phys = None
    try:
        info_fn = getattr(pltpu, "get_tpu_info", None)
        if info_fn is not None:
            phys = getattr(info_fn(), "vmem_capacity_bytes", None)
    except Exception:
        phys = None
    if not phys:
        return 32 * 1024 * 1024
    if phys >= 96 * 1024 * 1024:
        return 64 * 1024 * 1024
    return 48 * 1024 * 1024


def _choose_block_rows(bs, max_len, bytes_per_row, vmem_limit):
    """Size one buffer set (all 4 input blocks) at ~1/4 of the scoped VMEM
    limit, so the double-buffered pipeline uses ~1/2 with headroom for the
    output block and compiler scratch.  Rows aligned to 32 so int8/bool label
    blocks respect the (32,128) min-tile rule."""
    target_set_bytes = vmem_limit // 4
    rows = target_set_bytes // max(bytes_per_row, 1)
    rows = (rows // 32) * 32
    if rows >= bs or rows == 0:
        return bs  # single full-array block (any bs is valid as a full dim)
    return rows


def pallas_loss(start, end, start_gt, end_gt, *, block_rows=None):
    """start, end: (bs, MAX_LEN) probabilities; start_gt, end_gt: 0/1 labels
    (any integer/bool/float dtype — upcast to f32 inside the kernel; narrow
    dtypes such as int8 directly cut HBM traffic for this mem-bound kernel)."""
    bs, max_len = start.shape
    vmem_limit = _vmem_limit_bytes()
    bytes_per_row = max_len * sum(
        jnp.dtype(a.dtype).itemsize for a in (start, end, start_gt, end_gt))
    if block_rows is None:
        block_rows = _choose_block_rows(bs, max_len, bytes_per_row, vmem_limit)
    num_blocks = pl.cdiv(bs, block_rows)
    inv_n = 1.0 / float(bs * max_len)

    in_spec = pl.BlockSpec((block_rows, max_len), lambda i: (i, 0))
    partials = pl.pallas_call(
        functools.partial(_loss_kernel, bs=bs),
        out_shape=jax.ShapeDtypeStruct((num_blocks, _LANES), jnp.float32),
        grid_spec=pltpu.PrefetchScalarGridSpec(
            num_scalar_prefetch=0,
            grid=(num_blocks,),
            in_specs=[in_spec, in_spec, in_spec, in_spec],
            out_specs=pl.BlockSpec((1, _LANES), lambda i: (i, 0)),
        ),
        compiler_params=pltpu.CompilerParams(
            dimension_semantics=("parallel",),  # independent blocks: both TCs on v7x
            vmem_limit_bytes=vmem_limit,
        ),
    )(start, end, start_gt, end_gt)

    # Tiny epilogue: every lane of a row holds the same per-block partial sum.
    return -jnp.sum(partials[:, 0]) * inv_n


def reference_loss(start, end, start_gt, end_gt):
    # Matches torch.nn.BCELoss (mean reduction, log clamp at -100).
    def bce_mean(p, t):
        t = t.astype(jnp.float32)
        log_p = jnp.maximum(jnp.log(p), -100.0)
        log_1mp = jnp.maximum(jnp.log(1.0 - p), -100.0)
        return -jnp.mean(t * log_p + (1.0 - t) * log_1mp)

    return bce_mean(start, start_gt) + bce_mean(end, end_gt)


if __name__ == "__main__":
    key = jax.random.PRNGKey(0)

    def make_case(k, bs, max_len):
        k1, k2, k3, k4 = jax.random.split(k, 4)
        start = jax.nn.sigmoid(jax.random.normal(k1, (bs, max_len), jnp.float32))
        end = jax.nn.sigmoid(jax.random.normal(k2, (bs, max_len), jnp.float32))
        # int8 labels: 1 B/elem of HBM traffic; kernel upcasts in VMEM.
        start_gt = jax.random.bernoulli(k3, 0.5, (bs, max_len)).astype(jnp.int8)
        end_gt = jax.random.bernoulli(k4, 0.5, (bs, max_len)).astype(jnp.int8)
        return start, end, start_gt, end_gt

    ka, kb = jax.random.split(key)
    # Module-typical small shape: single full-array block, one grid step.
    case_small = make_case(ka, 8, 128)
    # Moderate shape with a forced small block to exercise the parallel grid
    # and the partial-last-block mask (200 = 3*64 + 8 rows in the last block).
    case_grid = make_case(kb, 200, 384)

    for args, br in ((case_small, None), (case_grid, 64)):
        got = jax.block_until_ready(pallas_loss(*args, block_rows=br))
        ref = jax.block_until_ready(reference_loss(*args))
        assert jnp.allclose(got, ref, rtol=1e-4, atol=1e-5), (got, ref, br)

    print("KERNEL_OK")
</pallas_src>

<mosaic_0001>
module attributes {stable_mosaic.version = 11 : i64} {
  func.func @_loss_kernel(%arg0: i32, %arg1: memref<8x128xf32, #tpu.memory_space<vmem>>, %arg2: memref<8x128xf32, #tpu.memory_space<vmem>>, %arg3: memref<8x128xi8, #tpu.memory_space<vmem>>, %arg4: memref<8x128xi8, #tpu.memory_space<vmem>>, %arg5: memref<1x128xf32, #tpu.memory_space<vmem>>) attributes {dimension_semantics = [#tpu.dimension_semantics<parallel>], iteration_bounds = array<i64: 1>, scalar_prefetch = 0 : i64, scratch_operands = 0 : i64, tpu.core_type = #tpu.core_type<tc>, window_params = [{transform_indices = @transform_0, window_bounds = array<i64: 8, 128>}, {transform_indices = @transform_1, window_bounds = array<i64: 8, 128>}, {transform_indices = @transform_2, window_bounds = array<i64: 8, 128>}, {transform_indices = @transform_3, window_bounds = array<i64: 8, 128>}, {transform_indices = @transform_4, window_bounds = array<i64: 1, 128>}]} {
    %c0 = arith.constant 0 : index
    %c0_0 = arith.constant 0 : index
    %0 = vector.load %arg1[%c0, %c0_0] : memref<8x128xf32, #tpu.memory_space<vmem>>, vector<8x128xf32>
    %c0_1 = arith.constant 0 : index
    %c0_2 = arith.constant 0 : index
    %1 = vector.load %arg2[%c0_1, %c0_2] : memref<8x128xf32, #tpu.memory_space<vmem>>, vector<8x128xf32>
    %c0_3 = arith.constant 0 : index
    %c0_4 = arith.constant 0 : index
    %2 = vector.load %arg3[%c0_3, %c0_4] : memref<8x128xi8, #tpu.memory_space<vmem>>, vector<8x128xi8>
    %3 = arith.sitofp %2 : vector<8x128xi8> to vector<8x128xf32>
    %c0_5 = arith.constant 0 : index
    %c0_6 = arith.constant 0 : index
    %4 = vector.load %arg4[%c0_5, %c0_6] : memref<8x128xi8, #tpu.memory_space<vmem>>, vector<8x128xi8>
    %5 = arith.sitofp %4 : vector<8x128xi8> to vector<8x128xf32>
    %c8_i32 = arith.constant 8 : i32
    %6 = arith.muli %arg0, %c8_i32 : i32
    %7 = tpu.iota {dimensions = array<i32: 0>} : vector<8x128xi32>
    %8 = vector.broadcast %6 : i32 to vector<8x128xi32>
    %9 = arith.addi %8, %7 : vector<8x128xi32>
    %c8_i32_7 = arith.constant 8 : i32
    %10 = vector.broadcast %c8_i32_7 : i32 to vector<8x128xi32>
    %11 = arith.cmpi slt, %9, %10 : vector<8x128xi32>
    %cst = arith.constant 5.000000e-01 : f32
    %12 = vector.broadcast %cst : f32 to vector<8x128xf32>
    %13 = arith.cmpf ogt, %3, %12 : vector<8x128xf32>
    %cst_8 = arith.constant 1.000000e+00 : f32
    %14 = vector.broadcast %cst_8 : f32 to vector<8x128xf32>
    %15 = arith.subf %14, %0 : vector<8x128xf32>
    %16 = arith.select %13, %0, %15 : vector<8x128xi1>, vector<8x128xf32>
    %cst_9 = arith.constant 1.000000e+00 : f32
    %17 = vector.broadcast %cst_9 : f32 to vector<8x128xf32>
    %18 = arith.select %11, %16, %17 : vector<8x128xi1>, vector<8x128xf32>
    %cst_10 = arith.constant 5.000000e-01 : f32
    %19 = vector.broadcast %cst_10 : f32 to vector<8x128xf32>
    %20 = arith.cmpf ogt, %5, %19 : vector<8x128xf32>
    %cst_11 = arith.constant 1.000000e+00 : f32
    %21 = vector.broadcast %cst_11 : f32 to vector<8x128xf32>
    %22 = arith.subf %21, %1 : vector<8x128xf32>
    %23 = arith.select %20, %1, %22 : vector<8x128xi1>, vector<8x128xf32>
    %cst_12 = arith.constant 1.000000e+00 : f32
    %24 = vector.broadcast %cst_12 : f32 to vector<8x128xf32>
    %25 = arith.select %11, %23, %24 : vector<8x128xi1>, vector<8x128xf32>
    %26 = math.log %18 : vector<8x128xf32>
    %cst_13 = arith.constant -1.000000e+02 : f32
    %27 = vector.broadcast %cst_13 : f32 to vector<8x128xf32>
    %28 = arith.maximumf %26, %27 : vector<8x128xf32>
    %29 = math.log %25 : vector<8x128xf32>
    %cst_14 = arith.constant -1.000000e+02 : f32
    %30 = vector.broadcast %cst_14 : f32 to vector<8x128xf32>
    %31 = arith.maximumf %29, %30 : vector<8x128xf32>
    %32 = arith.addf %28, %31 : vector<8x128xf32>
    %33 = vector.shape_cast %32 : vector<8x128xf32> to vector<1x8x128xf32>
    %cst_15 = arith.constant dense<0.000000e+00> : vector<1xf32>
    %34 = vector.multi_reduction <add>, %33, %cst_15 [1, 2] : vector<1x8x128xf32> to vector<1xf32>
    %35 = vector.shape_cast %34 : vector<1xf32> to vector<1x1x1xf32>
    %36 = vector.extract %35[0, 0, 0] : f32 from vector<1x1x1xf32>
    %37 = vector.broadcast %36 : f32 to vector<1x128xf32>
    %c0_16 = arith.constant 0 : index
    %c0_17 = arith.constant 0 : index
    %38 = vector.load %arg5[%c0_16, %c0_17] : memref<1x128xf32, #tpu.memory_space<vmem>>, vector<1x128xf32>
    tpu.vector_store %arg5[%c0_16, %c0_17], %37 {strides = array<i32>} : memref<1x128xf32, #tpu.memory_space<vmem>>, vector<1x128xf32>,
    return
  }
  func.func @transform_0(%arg0: i32) -> (i32, i32) {
    %c0_i32 = arith.constant 0 : i32
    %c0_i32_0 = arith.constant 0 : i32
    return %arg0, %c0_i32 : i32, i32
  }
  func.func @transform_1(%arg0: i32) -> (i32, i32) {
    %c0_i32 = arith.constant 0 : i32
    %c0_i32_0 = arith.constant 0 : i32
    return %arg0, %c0_i32 : i32, i32
  }
  func.func @transform_2(%arg0: i32) -> (i32, i32) {
    %c0_i32 = arith.constant 0 : i32
    %c0_i32_0 = arith.constant 0 : i32
    return %arg0, %c0_i32 : i32, i32
  }
  func.func @transform_3(%arg0: i32) -> (i32, i32) {
    %c0_i32 = arith.constant 0 : i32
    %c0_i32_0 = arith.constant 0 : i32
    return %arg0, %c0_i32 : i32, i32
  }
  func.func @transform_4(%arg0: i32) -> (i32, i32) {
    %c0_i32 = arith.constant 0 : i32
    %c0_i32_0 = arith.constant 0 : i32
    return %arg0, %c0_i32 : i32, i32
  }
}

</mosaic_0001>

<bundles_post_ra>
// kernel: tpu_custom_call.1
= control target key start
LH: loop header
LB: loop body
LE: loop exit
PB: predicated region body
PF: predicated region fallthrough
CT: control target
= control target key end

     0   :  { %9 = vsyncpa [#allocation3], 0  ;;  %s249_s0 = inlined_call_operand.hbm [shape: f32[8,128], index: 0, kind: input, shape index: {}]   ;;  %s250_s1 = inlined_call_operand.hbm [shape: f32[8,128], index: 1, kind: input, shape index: {}]   ;;  %s251_s2 = inlined_call_operand.vmem [shape: s8[8,128], index: 2, kind: input, shape index: {}]   ;;  %s252_s3 = inlined_call_operand.vmem [shape: s8[8,128], index: 3, kind: input, shape index: {}]   ;;  %s253_s4 = inlined_call_operand.hbm [shape: f32[1,128], index: 4, kind: output, shape index: {}]  }
   0x1   :  { %10 = vsyncpa [#allocation6], 0 }
   0x2   :  { %11 = vsyncpa [#allocation4], 0  ;;  %s179_s15 = smov [#allocation2]   ;;  %s180_s17 = smov [#allocation5]  }
   0x3   :  { %s18_s16 = sshll.u32 %s179_s15, 4  ;;  %s28_s18 = sshll.u32 %s180_s17, 4  ;;  %s19_s16 = int_to_ptr.vmem [resolvable:$true] %s18_s16  ;;  %s29_s18 = int_to_ptr.vmem [resolvable:$true] %s28_s18 }
   0x4   :  { %s107_s21 = scalar_lea.hbm %s249_s0, 128 }
   0x5   :  { %p108_p0 = scmp.ne.s32.totalorder %s249_s0, %s107_s21  ;;  %p111_p1 = scmp.lt.u32.totalorder %s107_s21, %s249_s0 }
   0x7   :  { %p113_p2 = pnand %p111_p1, %p108_p0 }
   0x9   :  { %116 = shalt.err (!%p113_p2)
}
   0xa   :  { %s117_s26 = scalar_lea.vmem %s19_s16, 128  ;;  %p122_p4 = scmp.lt.s32.totalorder %s19_s16, %s19_s16 }
   0xb   :  { %p118_p3 = scmp.ne.s32.totalorder %s19_s16, %s117_s26  ;;  %p123_p5 = scmp.lt.s32.totalorder %s117_s26, %s117_s26 }
   0xd   :  { %p124_p6 = por %p123_p5, %p122_p4 }
   0xf   :  { %p125_p7 = pnand %p124_p6, %p118_p3 }
  0x11   :  { %128 = shalt.err (!%p125_p7)
}
  0x12   :  { %21 = dma.hbm_to_vmem [thread:$0]  %s249_s0, 128, %s19_s16, [#allocation3]  }
  0x13   :  { %s129_s5 = scalar_lea.hbm %s250_s1, 128 }
  0x14   :  { %p130_p8 = scmp.ne.s32.totalorder %s250_s1, %s129_s5  ;;  %p133_p9 = scmp.lt.u32.totalorder %s129_s5, %s250_s1 }
  0x16   :  { %p135_p10 = pnand %p133_p9, %p130_p8 }
  0x18   :  { %138 = shalt.err (!%p135_p10)
}
  0x19   :  { %s139_s10 = scalar_lea.vmem %s29_s18, 128  ;;  %p144_p12 = scmp.lt.s32.totalorder %s29_s18, %s29_s18 }
  0x1a   :  { %p140_p11 = scmp.ne.s32.totalorder %s29_s18, %s139_s10  ;;  %p145_p13 = scmp.lt.s32.totalorder %s139_s10, %s139_s10 }
  0x1c   :  { %p146_p0 = por %p145_p13, %p144_p12 }
  0x1e   :  { %p147_p1 = pnand %p146_p0, %p140_p11 }
  0x20   :  { %150 = shalt.err (!%p147_p1)
}
  0x21   :  { %31 = dma.hbm_to_vmem [thread:$0]  %s250_s1, 128, %s29_s18, [#allocation6]  }
  0x22   :  { %173 = dma.done.wait [#allocation3], 128  }
  0x23   :  { %174 = vsyncadd [#allocation3], 4294967168 }
  0x24   :  { %175 = dma.done.wait [#allocation6], 128  }
  0x25   :  { %176 = vsyncadd [#allocation6], 4294967168  ;;  %v42_v0 = vld [vmem:[#allocation2] sm:$0xff]  ;;  %v43_v1 = vld [vmem:[#allocation5] sm:$0xff]  ;;  %s181_s1 = smov [#allocation7]  }
  0x26   :  { %v44_v2 = vld [vmem:[%s251_s2] sm:$0x3]  ;;  %v57_v6 = vsub.f32 1.0, %v42_v0  ;;  %v61_v8 = vsub.f32 1.0, %v43_v1  ;;  %s88_s2 = sshll.u32 %s181_s1, 4  ;;  %s89_s2 = int_to_ptr.vmem [resolvable:$true] %s88_s2 }
  0x27   :  { %v45_v3 = vunpack.c.0.s8 %v44_v2  ;;  %v47_v4 = vld [vmem:[%s252_s3] sm:$0x3]  ;;  %s151_s16 = scalar_lea.vmem %s89_s2, 16  ;;  %s155_s17 = scalar_lea.vmem %s89_s2, 32 }
  0x28   :  { %v48_v5 = vunpack.c.0.s8 %v47_v4  ;;  %p152_p2 = scmp.ne.s32.totalorder %s89_s2, %s151_s16  ;;  %p156_p3 = scmp.lt.s32.totalorder %s89_s2, %s89_s2 }
  0x29   :  { %v46_v7 = vcvt.s32.f32 %v45_v3  ;;  %p157_p4 = scmp.lt.s32.totalorder %s155_s17, %s151_s16 }
  0x2a   :  { %v49_v9 = vcvt.s32.f32 %v48_v5 }
  0x2b   :  { %vm56_vm0 = vcmp.gt.f32.partialorder %v46_v7, 0.5  ;;  %p158_p5 = por %p157_p4, %p156_p3 }
  0x2c   :  { %v58_v10 = vsel %vm56_vm0, %v42_v0, %v57_v6  ;;  %vm60_vm1 = vcmp.gt.f32.partialorder %v49_v9, 0.5 }
  0x2d   :  { %v62_v11 = vsel %vm60_vm1, %v43_v1, %v61_v8  ;;  %103 = vlog2.f32 %v58_v10  ;;  %p159_p6 = pnand %p158_p5, %p152_p2 }
  0x2e   :  { %105 = vlog2.f32 %v62_v11 }
  0x37   :  { %v104_v12 = vpop.eup %103 }
  0x38   :  { %v106_v13 = vpop.eup %105  ;;  %v65_v14 = vmul.f32 0.6931472, %v104_v12 }
  0x39   :  { %v68_v15 = vmul.f32 0.6931472, %v106_v13 }
  0x3a   :  { %v66_v16 = vmax.f32 %v65_v14, -100.0 }
  0x3b   :  { %v69_v17 = vmax.f32 %v68_v15, -100.0 }
  0x3d   :  { %v70_v18 = vadd.f32 %v69_v17, %v66_v16 }
  0x3f   :  { %71 = vadd.xlane.f32.xlu0 %v70_v18 }
  0xcc   :  { %v72_v19 = vpop.xlane.xlu0 %71 }
  0xcd   :  { %v73_v20 = vrot.slane %v72_v19, 4 }
  0xcf   :  { %v74_v21 = vadd.f32 %v73_v20, %v72_v19 }
  0xd1   :  { %v75_v22 = vrot.slane %v74_v21, 2 }
  0xd3   :  { %v76_v23 = vadd.f32 %v75_v22, %v74_v21 }
  0xd5   :  { %v77_v24 = vrot.slane %v76_v23, 1 }
  0xd7   :  { %v78_v25 = vadd.f32 %v77_v24, %v76_v23 }
  0xd9   :  { %98 = vpush %v78_v25 }
 0x10a   :  { %s99_s3 = spop %98 }
 0x10b   :  { %v80_v26 = vstv %s99_s3 }
 0x10c   :  { %81 = vst [vmem:[#allocation7] sm:$0x1] %v80_v26 }
 0x10d   :  { %162 = shalt.err (!%p159_p6)
}
 0x10e   :  { %s163_s20 = scalar_lea.hbm %s253_s4, 16 }
 0x10f   :  { %p164_p7 = scmp.ne.s32.totalorder %s253_s4, %s163_s20  ;;  %p167_p8 = scmp.lt.u32.totalorder %s163_s20, %s253_s4 }
 0x111   :  { %p169_p9 = pnand %p167_p8, %p164_p7 }
 0x113   :  { %172 = shalt.err (!%p169_p9)
}
 0x114   :  { %91 = dma.vmem_to_hbm [thread:$0]  %s89_s2, 16, %s253_s4, [#allocation4]  }
 0x115   :  { %177 = dma.done.wait [#allocation4], 16  }
 0x116   :  { %178 = vsyncadd [#allocation4], 4294967280 }
 0x117   :  { %95 = vsyncpa [#allocation3], 1 }
 0x118   :  { %96 = vsyncpa [#allocation6], 1 }
 0x119   :  { %97 = vsyncpa [#allocation4], 1 }

</bundles_post_ra>
